<compile_context>
chip_gen: v6e
topology: v6e:2x2x1
jax: 0.10.0
libtpu: 0.0.40
codegen_flags: <defaults>
</compile_context>

<pallas_src>
import functools
import math

import jax
import jax.numpy as jnp
from jax.experimental import pallas as pl
from jax.experimental.pallas import tpu as pltpu

LANE = 128
ACC_ROWS = 256          # fixed accumulator height (multiple of 8)
ROW_PAD = 8 * LANE      # flat inputs padded to whole (8,128) row-groups


def _round_up(x, m):
    return ((x + m - 1) // m) * m


def _device_kind():
    try:
        return jax.devices()[0].device_kind.lower()
    except Exception:
        return ""


def _focal_loss_kernel(x_ref, t_ref, acc_ref, *,
                       gamma, eps, m_rows, tm, acc_rows, bpc, need_mask):
    i = pl.program_id(1)

    # Init the resident accumulator block at the start of each core's reduction.
    @pl.when(i == 0)
    def _():
        acc_ref[...] = jnp.zeros_like(acc_ref)

    x = x_ref[...].astype(jnp.float32)
    t = t_ref[...].astype(jnp.float32)

    # -log(clamp(sigmoid(x), eps, 1-eps)) == clamp(softplus(-x), -log(1-eps), -log(eps))
    z = -x
    softplus = jnp.maximum(z, 0.0) + jnp.log(1.0 + jnp.exp(-jnp.abs(z)))
    loss = t * jnp.clip(softplus, -math.log(1.0 - eps), -math.log(eps))

    if gamma != 0.0:
        # (1 - clamp(sigmoid(x)))**gamma, reusing softplus:
        #   log(1 - sigmoid(x)) = z - softplus(z)   (z = -x)
        log_one_minus = jnp.clip(z - softplus, math.log(eps), math.log(1.0 - eps))
        loss = loss * jnp.exp(gamma * log_one_minus)

    def _accumulate(v):
        if tm == acc_rows:
            acc_ref[...] += v
        else:
            # Layout-preserving split of the leading dim; axis-0 sum is pure
            # vreg+vreg VPU adds (no XLU).
            acc_ref[...] += v.reshape(tm // acc_rows, acc_rows, LANE).sum(axis=0)

    if need_mask:
        blk = pl.program_id(0) * bpc + i
        is_partial = (blk + 1) * tm > m_rows

        @pl.when(is_partial)
        def _():
            # Mask rows past the valid data (partial trailing block, or fully
            # clamped duplicate block from the core split).  Applied after all
            # math so garbage/NaN from padded rows never reaches the acc.
            # int32 row ids: fine for < 2^31 rows (~256G elements).
            row_ids = blk * tm + jax.lax.broadcasted_iota(jnp.int32, (tm, LANE), 0)
            _accumulate(jnp.where(row_ids < m_rows, loss, 0.0))

        @pl.when(jnp.logical_not(is_partial))
        def _():
            _accumulate(loss)
    else:
        _accumulate(loss)


def focal_loss(inputt, target, *, gamma=0.0, eps=1e-7, tm=None, num_cores=None):
    """Pallas TPU implementation of FocalLoss.forward. Returns a scalar f32."""
    assert inputt.shape == target.shape
    x_flat = inputt.reshape(-1)
    t_flat = target.reshape(-1)
    n = x_flat.shape[0]

    # Pad the flat arrays to whole (8,128) row-groups.  Padded target == 0 and
    # padded x == 0 contribute exactly 0 to the sum.  <= 1023 extra elements.
    if n % ROW_PAD != 0:
        pad = ROW_PAD - (n % ROW_PAD)
        x_flat = jnp.pad(x_flat, (0, pad))
        t_flat = jnp.pad(t_flat, (0, pad))
    m_rows = x_flat.shape[0] // LANE          # multiple of 8
    x2 = x_flat.reshape(m_rows, LANE)
    t2 = t_flat.reshape(m_rows, LANE)

    kind = _device_kind()
    itemsize = max(jnp.dtype(x2.dtype).itemsize, jnp.dtype(t2.dtype).itemsize)
    if num_cores is None:
        # Only v7x has 2 TensorCores worth sharding the grid over; on v5e/v6e
        # a size-2 "parallel" axis is just a sequential loop (and can force a
        # duplicated, fully-masked block when nblk is odd).
        num_cores = 2 if "v7" in kind else 1
    if tm is None:
        if "v7" in kind:          # 3.2 TB/s per TC: move >=4 MiB/input per step
            tm = 8192 if itemsize >= 4 else 16384
        else:                     # v6e / v5e / unknown (v5e: 16 MiB scoped VMEM)
            tm = 4096 if itemsize >= 4 else 8192

    # Tile rows: multiple of the accumulator height, never larger than the
    # (padded) array, so only the last block can be partial.
    if m_rows <= ACC_ROWS:
        acc_rows = m_rows
        tm_eff = m_rows
    else:
        acc_rows = ACC_ROWS
        tm_eff = min(_round_up(tm, ACC_ROWS), (m_rows // ACC_ROWS) * ACC_ROWS)

    nblk = pl.cdiv(m_rows, tm_eff)
    nc = num_cores if nblk >= num_cores else 1
    bpc = pl.cdiv(nblk, nc)
    need_mask = (nc * bpc * tm_eff) != m_rows

    kernel = functools.partial(
        _focal_loss_kernel,
        gamma=float(gamma), eps=float(eps),
        m_rows=m_rows, tm=tm_eff, acc_rows=acc_rows, bpc=bpc,
        need_mask=need_mask)

    def in_map(c, i):
        # Clamp so a trailing duplicate block stays in bounds (zeroed in-kernel).
        return (jnp.minimum(c * bpc + i, nblk - 1), 0)

    # Double-buffered inputs + (small) double-buffered output accumulator.
    vmem_need = (2 * tm_eff * LANE * (jnp.dtype(x2.dtype).itemsize
                                      + jnp.dtype(t2.dtype).itemsize)
                 + 2 * acc_rows * LANE * 4)
    vmem_limit = int(min(max(2 * vmem_need, 16 << 20), 48 << 20))

    partials = pl.pallas_call(
        kernel,
        out_shape=jax.ShapeDtypeStruct((nc * acc_rows, LANE), jnp.float32),
        grid_spec=pltpu.PrefetchScalarGridSpec(
            num_scalar_prefetch=0,
            grid=(nc, bpc),
            in_specs=[pl.BlockSpec((tm_eff, LANE), in_map),
                      pl.BlockSpec((tm_eff, LANE), in_map)],
            out_specs=pl.BlockSpec((acc_rows, LANE), lambda c, i: (c, 0)),
        ),
        compiler_params=pltpu.CompilerParams(
            dimension_semantics=("parallel", "arbitrary"),
            vmem_limit_bytes=vmem_limit),
    )(x2, t2)

    # Tiny (<= 256 KiB) partial-sum slab; one cheap trailing tree-reduction.
    return jnp.sum(partials)


if __name__ == "__main__":
    key = jax.random.PRNGKey(0)
    k1, k2, k3, k4, k5, k6 = jax.random.split(key, 6)

    def ref_focal(xx, tt, gamma, eps):
        logit = jnp.clip(jax.nn.sigmoid(xx.astype(jnp.float32)), eps, 1.0 - eps)
        return jnp.sum(-tt.astype(jnp.float32) * jnp.log(logit)
                       * (1.0 - logit) ** gamma)

    # 1) Small NCHW (batch=2, channels=4, spatial=16x16): gamma=0 (module
    #    default) and gamma=2.
    x = jax.random.normal(k1, (2, 4, 16, 16), dtype=jnp.float32)
    tgt = (jax.random.uniform(k2, (2, 4, 16, 16)) > 0.5).astype(jnp.float32)
    for g in (0.0, 2.0):
        out = jax.block_until_ready(focal_loss(x, tgt, gamma=g, eps=1e-7))
        ref = ref_focal(x, tgt, g, 1e-7)
        assert jnp.allclose(out, ref, rtol=1e-4, atol=1e-2), (g, out, ref)

    # 2) Ragged element count (exercises the pad path).
    xr = jax.random.normal(k3, (3, 5, 11, 7), dtype=jnp.float32)
    tr = (jax.random.uniform(k4, (3, 5, 11, 7)) > 0.5).astype(jnp.float32)
    out = jax.block_until_ready(focal_loss(xr, tr, gamma=2.0, eps=1e-7))
    ref = ref_focal(xr, tr, 2.0, 1e-7)
    assert jnp.allclose(out, ref, rtol=1e-4, atol=1e-2), (out, ref)

    # 3) Multi-block + forced 2-core split with a partial trailing block:
    #    exercises the pl.when-gated mask and the reshape-sum accumulator.
    xb = jax.random.normal(k5, (2, 4, 128, 80), dtype=jnp.float32)
    tb = (jax.random.uniform(k6, (2, 4, 128, 80)) > 0.5).astype(jnp.float32)
    out = jax.block_until_ready(focal_loss(xb, tb, gamma=2.0, eps=1e-7,
                                           tm=512, num_cores=2))
    ref = ref_focal(xb, tb, 2.0, 1e-7)
    assert jnp.allclose(out, ref, rtol=1e-4, atol=1e-1), (out, ref)

    print("KERNEL_OK")
</pallas_src>

<mosaic_0001>
module attributes {stable_mosaic.version = 11 : i64} {
  func.func @_focal_loss_kernel(%arg0: i32, %arg1: i32, %arg2: memref<16x128xf32, #tpu.memory_space<vmem>>, %arg3: memref<16x128xf32, #tpu.memory_space<vmem>>, %arg4: memref<16x128xf32, #tpu.memory_space<vmem>>) attributes {dimension_semantics = [#tpu.dimension_semantics<parallel>, #tpu.dimension_semantics<arbitrary>], iteration_bounds = array<i64: 1, 1>, scalar_prefetch = 0 : i64, scratch_operands = 0 : i64, tpu.core_type = #tpu.core_type<tc>, window_params = [{transform_indices = @transform_0, window_bounds = array<i64: 16, 128>}, {transform_indices = @transform_1, window_bounds = array<i64: 16, 128>}, {transform_indices = @transform_2, window_bounds = array<i64: 16, 128>}]} {
    %c0_i32 = arith.constant 0 : i32
    %0 = arith.cmpi eq, %arg1, %c0_i32 : i32
    %1 = arith.extui %0 : i1 to i32
    %c0_i32_0 = arith.constant 0 : i32
    %2 = arith.cmpi ne, %1, %c0_i32_0 : i32
    scf.if %2 {
      %cst_13 = arith.constant 0.000000e+00 : f32
      %25 = vector.broadcast %cst_13 : f32 to vector<16x128xf32>
      %c0_14 = arith.constant 0 : index
      %c0_15 = arith.constant 0 : index
      %26 = vector.load %arg4[%c0_14, %c0_15] : memref<16x128xf32, #tpu.memory_space<vmem>>, vector<16x128xf32>
      tpu.vector_store %arg4[%c0_14, %c0_15], %25 {strides = array<i32>} : memref<16x128xf32, #tpu.memory_space<vmem>>, vector<16x128xf32>,
    } else {
    }
    %c0 = arith.constant 0 : index
    %c0_1 = arith.constant 0 : index
    %3 = vector.load %arg2[%c0, %c0_1] : memref<16x128xf32, #tpu.memory_space<vmem>>, vector<16x128xf32>
    %c0_2 = arith.constant 0 : index
    %c0_3 = arith.constant 0 : index
    %4 = vector.load %arg3[%c0_2, %c0_3] : memref<16x128xf32, #tpu.memory_space<vmem>>, vector<16x128xf32>
    %cst = arith.constant 0.000000e+00 : f32
    %5 = vector.broadcast %cst : f32 to vector<16x128xf32>
    %6 = arith.subf %5, %3 : vector<16x128xf32>
    %cst_4 = arith.constant 0.000000e+00 : f32
    %7 = vector.broadcast %cst_4 : f32 to vector<16x128xf32>
    %8 = arith.maximumf %6, %7 : vector<16x128xf32>
    %9 = math.absf %6 : vector<16x128xf32>
    %cst_5 = arith.constant 0.000000e+00 : f32
    %10 = vector.broadcast %cst_5 : f32 to vector<16x128xf32>
    %11 = arith.subf %10, %9 : vector<16x128xf32>
    %12 = math.exp %11 : vector<16x128xf32>
    %cst_6 = arith.constant 1.000000e+00 : f32
    %13 = vector.broadcast %cst_6 : f32 to vector<16x128xf32>
    %14 = arith.addf %13, %12 : vector<16x128xf32>
    %15 = math.log %14 : vector<16x128xf32>
    %16 = arith.addf %8, %15 : vector<16x128xf32>
    %cst_7 = arith.constant 1.00000008E-7 : f32
    %cst_8 = arith.constant 16.1180954 : f32
    %17 = vector.broadcast %cst_7 : f32 to vector<16x128xf32>
    %18 = arith.maximumf %17, %16 : vector<16x128xf32>
    %19 = vector.broadcast %cst_8 : f32 to vector<16x128xf32>
    %20 = arith.minimumf %19, %18 : vector<16x128xf32>
    %21 = arith.mulf %4, %20 : vector<16x128xf32>
    %c0_9 = arith.constant 0 : index
    %c0_10 = arith.constant 0 : index
    %22 = vector.load %arg4[%c0_9, %c0_10] : memref<16x128xf32, #tpu.memory_space<vmem>>, vector<16x128xf32>
    %23 = arith.addf %22, %21 : vector<16x128xf32>
    %c0_11 = arith.constant 0 : index
    %c0_12 = arith.constant 0 : index
    %24 = vector.load %arg4[%c0_11, %c0_12] : memref<16x128xf32, #tpu.memory_space<vmem>>, vector<16x128xf32>
    tpu.vector_store %arg4[%c0_11, %c0_12], %23 {strides = array<i32>} : memref<16x128xf32, #tpu.memory_space<vmem>>, vector<16x128xf32>,
    return
  }
  func.func @transform_0(%arg0: i32, %arg1: i32) -> (i32, i32) {
    %c1_i32 = arith.constant 1 : i32
    %0 = arith.muli %arg0, %c1_i32 : i32
    %1 = arith.addi %0, %arg1 : i32
    %c0_i32 = arith.constant 0 : i32
    %2 = arith.minsi %1, %c0_i32 : i32
    %c0_i32_0 = arith.constant 0 : i32
    %c0_i32_1 = arith.constant 0 : i32
    return %2, %c0_i32_0 : i32, i32
  }
  func.func @transform_1(%arg0: i32, %arg1: i32) -> (i32, i32) {
    %c1_i32 = arith.constant 1 : i32
    %0 = arith.muli %arg0, %c1_i32 : i32
    %1 = arith.addi %0, %arg1 : i32
    %c0_i32 = arith.constant 0 : i32
    %2 = arith.minsi %1, %c0_i32 : i32
    %c0_i32_0 = arith.constant 0 : i32
    %c0_i32_1 = arith.constant 0 : i32
    return %2, %c0_i32_0 : i32, i32
  }
  func.func @transform_2(%arg0: i32, %arg1: i32) -> (i32, i32) {
    %c0_i32 = arith.constant 0 : i32
    %c0_i32_0 = arith.constant 0 : i32
    return %arg0, %c0_i32 : i32, i32
  }
}

</mosaic_0001>

<bundles_post_ra>
// kernel: tpu_custom_call.1
= control target key start
LH: loop header
LB: loop body
LE: loop exit
PB: predicated region body
PF: predicated region fallthrough
CT: control target
= control target key end

     0   :  { %7 = vsyncpa [#allocation3], 0  ;;  %s242_s0 = inlined_call_operand.hbm [shape: f32[16,128], index: 0, kind: input, shape index: {}]   ;;  %s243_s1 = inlined_call_operand.hbm [shape: f32[16,128], index: 1, kind: input, shape index: {}]   ;;  %s244_s2 = inlined_call_operand.hbm [shape: f32[16,128], index: 2, kind: output, shape index: {}]  }
   0x1   :  { %8 = vsyncpa [#allocation6], 0 }
   0x2   :  { %9 = vsyncpa [#allocation4], 0  ;;  %s204_s9 = smov [#allocation2]  }
   0x3   :  { %s21_s10 = sshll.u32 %s204_s9, 4  ;;  %s22_s10 = int_to_ptr.vmem [resolvable:$true] %s21_s10 }
   0x4   :  { %s146_s11 = scalar_lea.vmem %s22_s10, 256  ;;  %p151_p1 = scmp.lt.s32.totalorder %s22_s10, %s22_s10 }
   0x5   :  { %p147_p0 = scmp.ne.s32.totalorder %s22_s10, %s146_s11  ;;  %p152_p2 = scmp.lt.s32.totalorder %s146_s11, %s146_s11 }
   0x7   :  { %p153_p3 = por %p152_p2, %p151_p1 }
   0x9   :  { %p154_p4 = pnand %p153_p3, %p147_p0 }
   0xb   :  { %157 = shalt.err (!%p154_p4)
}
   0xc   :  { %s205_s12 = smov 128   ;;  %s206_s13 = smov 8  }
   0xd   :  { %27 = dma.hbm_to_vmem [thread:$0]  %s242_s0, 256, %s22_s10, [#allocation3], %s205_s12, %s205_s12, %s206_s13  }
   0xe   :  { %s207_s16 = smov [#allocation5]  }
   0xf   :  { %s39_s17 = sshll.u32 %s207_s16, 4  ;;  %s40_s17 = int_to_ptr.vmem [resolvable:$true] %s39_s17 }
  0x10   :  { %s166_s18 = scalar_lea.vmem %s40_s17, 256  ;;  %p171_p6 = scmp.lt.s32.totalorder %s40_s17, %s40_s17 }
  0x11   :  { %p167_p5 = scmp.ne.s32.totalorder %s40_s17, %s166_s18  ;;  %p172_p7 = scmp.lt.s32.totalorder %s166_s18, %s166_s18 }
  0x13   :  { %p173_p8 = por %p172_p7, %p171_p6 }
  0x15   :  { %p174_p9 = pnand %p173_p8, %p167_p5 }
  0x17   :  { %177 = shalt.err (!%p174_p9)
}
  0x18   :  { %45 = dma.hbm_to_vmem [thread:$0]  %s243_s1, 256, %s40_s17, [#allocation6], %s205_s12, %s205_s12, %s206_s13  }
  0x19   :  { %198 = dma.done.wait [#allocation3], 256  }
  0x1a   :  { %199 = vsyncadd [#allocation3], 4294967040 }
  0x1b   :  { %200 = dma.done.wait [#allocation6], 256  }
  0x1c   :  { %201 = vsyncadd [#allocation6], 4294967040  ;;  %v66_v0 = vld [vmem:[#allocation2] sm:$0xff]  ;;  %v67_v1 = vld [vmem:[#allocation2 + $0x8] sm:$0xff]  ;;  %s208_s0 = smov [#allocation7]  }
  0x1d   :  { %v70_v2 = vsub.f32 0.0, %v66_v0  ;;  %v71_v3 = vsub.f32 0.0, %v67_v1  ;;  %v68_v23 = vld [vmem:[#allocation5] sm:$0xff]  ;;  %v69_v26 = vld [vmem:[#allocation5 + $0x8] sm:$0xff]  ;;  %s107_s1 = sshll.u32 %s208_s0, 4  ;;  %s108_s1 = int_to_ptr.vmem [resolvable:$true] %s107_s1 }
  0x1e   :  { %s178_s21 = scalar_lea.vmem %s108_s1, 256  ;;  %p183_p11 = scmp.lt.s32.totalorder %s108_s1, %s108_s1 }
  0x1f   :  { %v74_v4 = vand.u32 2147483647, %v70_v2  ;;  %v75_v5 = vand.u32 2147483647, %v71_v3  ;;  %v72_v14 = vmax.f32 %v70_v2, 0.0  ;;  %v73_v16 = vmax.f32 %v71_v3, 0.0  ;;  %p179_p10 = scmp.ne.s32.totalorder %s108_s1, %s178_s21  ;;  %p184_p12 = scmp.lt.s32.totalorder %s178_s21, %s178_s21 }
  0x21   :  { %v76_v6 = vsub.f32 0.0, %v74_v4  ;;  %v77_v7 = vsub.f32 0.0, %v75_v5  ;;  %p185_p13 = por %p184_p12, %p183_p11 }
  0x23   :  { %v78_v8 = vmul.f32 1.442695, %v76_v6  ;;  %v80_v9 = vmul.f32 1.442695, %v77_v7  ;;  %p186_p0 = pnand %p185_p13, %p179_p10 }
  0x25   :  { %130 = vpow2.f32 %v78_v8 }
  0x26   :  { %132 = vpow2.f32 %v80_v9 }
  0x32   :  { %v131_v10 = vpop.eup %130 }
  0x33   :  { %v133_v11 = vpop.eup %132  ;;  %v82_v12 = vadd.f32 1.0, %v131_v10 }
  0x34   :  { %v83_v13 = vadd.f32 1.0, %v133_v11 }
  0x35   :  { %134 = vlog2.f32 %v82_v12 }
  0x36   :  { %136 = vlog2.f32 %v83_v13 }
  0x42   :  { %v135_v15 = vpop.eup %134 }
  0x43   :  { %v137_v17 = vpop.eup %136  ;;  %v85_v18 = vmul.f32 0.6931472, %v135_v15 }
  0x44   :  { %v87_v19 = vmul.f32 0.6931472, %v137_v17 }
  0x45   :  { %v88_v20 = vadd.f32 %v85_v18, %v72_v14 }
  0x46   :  { %v89_v21 = vadd.f32 %v87_v19, %v73_v16 }
  0x47   :  { %v90_v22 = vmax.f32 %v88_v20, 1.0000001e-07 }
  0x48   :  { %v91_v24 = vmax.f32 %v89_v21, 1.0000001e-07 }
  0x49   :  { %v92_v25 = vmin.f32 %v90_v22, 16.118095 }
  0x4a   :  { %v93_v27 = vmin.f32 %v91_v24, 16.118095 }
  0x4b   :  { %v94_v28 = vmul.f32 %v92_v25, %v68_v23 }
  0x4c   :  { %v95_v29 = vmul.f32 %v93_v27, %v69_v26 }
  0x4d   :  { %100 = vst [vmem:[#allocation7] sm:$0xff] %v94_v28 }
  0x4e   :  { %101 = vst [vmem:[#allocation7 + $0x8] sm:$0xff] %v95_v29 }
  0x4f   :  { %189 = shalt.err (!%p186_p0)
}
  0x50   :  { %113 = dma.vmem_to_hbm [thread:$0]  %s108_s1, 256, %s244_s2, [#allocation4], %s205_s12, %s205_s12, %s206_s13  }
  0x51   :  { %202 = dma.done.wait [#allocation4], 256  }
  0x52   :  { %203 = vsyncadd [#allocation4], 4294967040 }
  0x53   :  { %117 = vsyncpa [#allocation3], 1 }
  0x54   :  { %118 = vsyncpa [#allocation6], 1 }
  0x55   :  { %119 = vsyncpa [#allocation4], 1 }

</bundles_post_ra>
